<compile_context>
chip_gen: v5e
topology: v5e:2x2
jax: 0.10.0
libtpu: 0.0.40
codegen_flags: <defaults>
</compile_context>

<pallas_src>
import functools

import jax
import jax.numpy as jnp
from jax.experimental import pallas as pl
from jax.experimental.pallas import tpu as pltpu

MAXPAD = 7    # max "same" padding across branches (kernel 15 -> pad 7)
KMAX = 15     # fused tap count


def _round_up(n, m):
    return ((n + m - 1) // m) * m


def _sqwave_kernel(x_ref, w_ref, b_ref, sel_ref, wf_ref, bf_ref, o_ref,
                   xp_ref, col_ref):
    # x_ref  : (1, C, L)          bf16 input tile (one batch element)
    # w_ref  : (3C, KMAX*C)       bf16 fused branch conv weight (im2col layout)
    # b_ref  : (3C, 1)            f32 branch biases, rows = [edges; plateaus; levels]
    # sel_ref: (3C, 1)            f32, 1.0 on sigmoid (plateau) rows, 0.0 on tanh rows
    # wf_ref : (C, 3C)            bf16 1x1 fusion weight
    # bf_ref : (C, 1)             f32 fusion bias
    # o_ref  : (1, C, L)          output tile
    # xp_ref : (C, L + 2*MAXPAD)  bf16 scratch for in-kernel "same" padding
    # col_ref: (KMAX*C, L)        bf16 im2col scratch
    C = x_ref.shape[1]
    L = x_ref.shape[2]

    # In-kernel "same" zero padding: only the two MAXPAD halos need zeroing;
    # the interior is fully overwritten every grid step.
    zeros_halo = jnp.zeros((C, MAXPAD), xp_ref.dtype)
    xp_ref[:, :MAXPAD] = zeros_halo
    xp_ref[:, MAXPAD + L:] = zeros_halo
    xp_ref[:, MAXPAD:MAXPAD + L] = x_ref[0]

    # im2col: 15 shifted ref->ref copies; rows [k*C, (k+1)*C) hold xp[:, k:k+L].
    for k in range(KMAX):                      # static, unrolled
        col_ref[k * C:(k + 1) * C, :] = xp_ref[:, k:k + L]

    # All three branch convolutions as ONE MXU dot (contraction dim = 15C), f32 acc.
    acc = jnp.dot(w_ref[...], col_ref[...],
                  preferred_element_type=jnp.float32) + b_ref[...]

    # Per-branch activation in a single EUP pass: tanh(z) = 2*sigmoid(2z) - 1.
    sel = sel_ref[...]                         # (3C, 1) broadcasts over L
    s = jax.nn.sigmoid(acc * (2.0 - sel))      # tanh rows see 2*acc, sigmoid rows see acc
    act = 2.0 * s - 1.0 + sel * (1.0 - s)      # tanh rows: 2s-1, sigmoid rows: s

    # 1x1 fusion over the stacked branches: one (C, 3C) @ (3C, L) dot.
    fused = jnp.dot(wf_ref[...], act.astype(wf_ref.dtype),
                    preferred_element_type=jnp.float32) + bf_ref[...]
    o_ref[0] = fused.astype(o_ref.dtype)


@functools.partial(jax.jit, static_argnames=("compute_dtype", "out_dtype"))
def square_wave_detector(x, params, compute_dtype=jnp.bfloat16,
                         out_dtype=jnp.float32):
    """x: (B, C, L) float32 (PyTorch NCL layout). Returns (B, C, L) in out_dtype."""
    B, C, L = x.shape
    we, be, wp, bp, wl, bl, wf, bf = params   # PyTorch conv layouts (Cout, Cin, K)

    # Pad channels to a multiple of 8 (sublanes) and length to a multiple of 128
    # (lanes) so every block is tile-aligned and output stores are lane-dense.
    Cp = _round_up(C, 8)
    Lp = _round_up(L, 128)

    def pad_conv(w, b):
        return (jnp.pad(w, ((0, Cp - C), (0, Cp - C), (0, 0))),
                jnp.pad(b, ((0, Cp - C),)))

    we_p, be_p = pad_conv(we, be)
    wp_p, bp_p = pad_conv(wp, bp)
    wl_p, bl_p = pad_conv(wl, bl)

    # 1x1 fusion weight (C, 3C, 1): pad each branch's Cin block to Cp separately so the
    # column blocks line up with the padded [edges; plateaus; levels] stacking.
    wf2 = wf[:, :, 0]                                                 # (C, 3C)
    wf_p = jnp.concatenate(
        [jnp.pad(wf2[:, i * C:(i + 1) * C], ((0, Cp - C), (0, Cp - C)))
         for i in range(3)], axis=1)                                  # (Cp, 3Cp)
    bf_p = jnp.pad(bf, ((0, Cp - C),)).reshape(Cp, 1)                 # f32

    # Fuse the branch conv weights into one (KMAX, 3Cp, Cp) tensor with taps aligned to
    # the common pad=7 window, then reshape to the im2col layout (3Cp, KMAX*Cp):
    #   edges    K=5,  pad=2 -> taps 5..9
    #   plateaus K=15, pad=7 -> taps 0..14
    #   levels   K=7,  pad=3 -> taps 4..10
    w_all = jnp.zeros((KMAX, 3 * Cp, Cp), jnp.float32)
    w_all = w_all.at[5:10, 0:Cp, :].set(jnp.transpose(we_p, (2, 0, 1)))
    w_all = w_all.at[0:15, Cp:2 * Cp, :].set(jnp.transpose(wp_p, (2, 0, 1)))
    w_all = w_all.at[4:11, 2 * Cp:3 * Cp, :].set(jnp.transpose(wl_p, (2, 0, 1)))
    w_im2col = jnp.transpose(w_all, (1, 0, 2)).reshape(3 * Cp, KMAX * Cp)

    b_all = jnp.concatenate([be_p, bp_p, bl_p]).reshape(3 * Cp, 1)    # f32
    sel = jnp.concatenate([jnp.zeros((Cp,), jnp.float32),
                           jnp.ones((Cp,), jnp.float32),
                           jnp.zeros((Cp,), jnp.float32)]).reshape(3 * Cp, 1)

    x_p = jnp.pad(x, ((0, 0), (0, Cp - C), (0, Lp - L))).astype(compute_dtype)
    w_c = w_im2col.astype(compute_dtype)
    wf_c = wf_p.astype(compute_dtype)

    def const_spec(shape):
        # Grid-invariant operand: single-buffered (no double-buffering needed).
        return pl.BlockSpec(shape, lambda b: (0,) * len(shape),
                            pipeline_mode=pl.Buffered(1))

    out = pl.pallas_call(
        _sqwave_kernel,
        out_shape=jax.ShapeDtypeStruct((B, Cp, Lp), out_dtype),
        grid=(B,),
        in_specs=[
            pl.BlockSpec((1, Cp, Lp), lambda b: (b, 0, 0)),   # x: one batch elem / step
            const_spec((3 * Cp, KMAX * Cp)),                  # fused conv weight (im2col)
            const_spec((3 * Cp, 1)),                          # branch biases
            const_spec((3 * Cp, 1)),                          # sigmoid/tanh selector
            const_spec((Cp, 3 * Cp)),                         # 1x1 fusion weight
            const_spec((Cp, 1)),                              # fusion bias
        ],
        out_specs=pl.BlockSpec((1, Cp, Lp), lambda b: (b, 0, 0)),
        scratch_shapes=[
            pltpu.VMEM((Cp, Lp + 2 * MAXPAD), compute_dtype),  # padded input
            pltpu.VMEM((KMAX * Cp, Lp), compute_dtype),        # im2col
        ],
        compiler_params=pltpu.CompilerParams(
            dimension_semantics=("parallel",)),
    )(x_p, w_c, b_all, sel, wf_c, bf_p)

    return out[:, :C, :L]


# ---------------- pure-JAX reference (for correctness check) ----------------
def _conv1d_ref(x, w, b, pad):
    # x: (B, Cin, L); w: (Cout, Cin, K) (PyTorch layout); b: (Cout,)
    B, Cin, L = x.shape
    Cout, _, K = w.shape
    xp = jnp.pad(x, ((0, 0), (0, 0), (pad, pad)))
    out = jnp.zeros((B, Cout, L), jnp.float32)
    for k in range(K):
        out = out + jnp.einsum('oc,bcl->bol', w[:, :, k], xp[:, :, k:k + L])
    return out + b[None, :, None]


def _ref_forward(x, params):
    we, be, wp, bp, wl, bl, wf, bf = params
    edges = jnp.tanh(_conv1d_ref(x, we, be, 2))
    plateaus = jax.nn.sigmoid(_conv1d_ref(x, wp, bp, 7))
    levels = jnp.tanh(_conv1d_ref(x, wl, bl, 3))
    combined = jnp.concatenate([edges, plateaus, levels], axis=1)    # (B, 3C, L)
    out = jnp.einsum('oc,bcl->bol', wf[:, :, 0], combined) + bf[None, :, None]
    return out


def _init_params(key, C):
    ks = jax.random.split(key, 8)
    s = 0.1
    we = s * jax.random.normal(ks[0], (C, C, 5), jnp.float32)        # (Cout, Cin, K)
    be = s * jax.random.normal(ks[1], (C,), jnp.float32)
    wp = s * jax.random.normal(ks[2], (C, C, 15), jnp.float32)
    bp = s * jax.random.normal(ks[3], (C,), jnp.float32)
    wl = s * jax.random.normal(ks[4], (C, C, 7), jnp.float32)
    bl = s * jax.random.normal(ks[5], (C,), jnp.float32)
    wf = s * jax.random.normal(ks[6], (C, 3 * C, 1), jnp.float32)    # 1x1 fusion conv
    bf = s * jax.random.normal(ks[7], (C,), jnp.float32)
    return (we, be, wp, bp, wl, bl, wf, bf)


if __name__ == "__main__":
    B, C, L = 2, 4, 16
    key = jax.random.PRNGKey(0)
    kx, kp = jax.random.split(key)
    x = jax.random.normal(kx, (B, C, L), jnp.float32)
    params = _init_params(kp, C)

    out = square_wave_detector(x, params)
    out = jax.block_until_ready(out)

    ref = _ref_forward(x, params)
    assert out.shape == (B, C, L)
    err = float(jnp.max(jnp.abs(out - ref)))
    # bf16 inputs/weights with f32 accumulation -> compare to the f32 reference loosely.
    assert err < 5e-2, f"mismatch: max abs err {err}"
    print("KERNEL_OK")
</pallas_src>

<mosaic_0001>
module attributes {stable_mosaic.version = 11 : i64} {
  func.func @_sqwave_kernel(%arg0: i32, %arg1: memref<1x8x128xbf16, #tpu.memory_space<vmem>>, %arg2: memref<24x120xbf16, #tpu.memory_space<vmem>>, %arg3: memref<24x1xf32, #tpu.memory_space<vmem>>, %arg4: memref<24x1xf32, #tpu.memory_space<vmem>>, %arg5: memref<8x24xbf16, #tpu.memory_space<vmem>>, %arg6: memref<8x1xf32, #tpu.memory_space<vmem>>, %arg7: memref<1x8x128xf32, #tpu.memory_space<vmem>>, %arg8: memref<8x142xbf16, #tpu.memory_space<vmem>>, %arg9: memref<120x128xbf16, #tpu.memory_space<vmem>>) attributes {dimension_semantics = [#tpu.dimension_semantics<parallel>], iteration_bounds = array<i64: 2>, scalar_prefetch = 0 : i64, scratch_operands = 2 : i64, tpu.core_type = #tpu.core_type<tc>, window_params = [{transform_indices = @transform_0, window_bounds = array<i64: 1, 8, 128>}, {pipeline_mode = #tpu.pipeline_mode<synchronous>, transform_indices = @transform_1, window_bounds = array<i64: 24, 120>}, {pipeline_mode = #tpu.pipeline_mode<synchronous>, transform_indices = @transform_2, window_bounds = array<i64: 24, 1>}, {pipeline_mode = #tpu.pipeline_mode<synchronous>, transform_indices = @transform_3, window_bounds = array<i64: 24, 1>}, {pipeline_mode = #tpu.pipeline_mode<synchronous>, transform_indices = @transform_4, window_bounds = array<i64: 8, 24>}, {pipeline_mode = #tpu.pipeline_mode<synchronous>, transform_indices = @transform_5, window_bounds = array<i64: 8, 1>}, {transform_indices = @transform_6, window_bounds = array<i64: 1, 8, 128>}]} {
    %cst = arith.constant 0.000000e+00 : bf16
    %0 = vector.broadcast %cst : bf16 to vector<8x7xbf16>
    %c0 = arith.constant 0 : index
    %c0_0 = arith.constant 0 : index
    %1 = vector.load %arg8[%c0, %c0_0] : memref<8x142xbf16, #tpu.memory_space<vmem>>, vector<8x7xbf16>
    tpu.vector_store %arg8[%c0, %c0_0], %0 {strides = array<i32>} : memref<8x142xbf16, #tpu.memory_space<vmem>>, vector<8x7xbf16>,
    %c0_1 = arith.constant 0 : index
    %c135 = arith.constant 135 : index
    %2 = vector.load %arg8[%c0_1, %c135] : memref<8x142xbf16, #tpu.memory_space<vmem>>, vector<8x7xbf16>
    tpu.vector_store %arg8[%c0_1, %c135], %0 {strides = array<i32>} : memref<8x142xbf16, #tpu.memory_space<vmem>>, vector<8x7xbf16>,
    %c0_2 = arith.constant 0 : index
    %c0_3 = arith.constant 0 : index
    %c0_4 = arith.constant 0 : index
    %3 = vector.load %arg1[%c0_2, %c0_3, %c0_4] : memref<1x8x128xbf16, #tpu.memory_space<vmem>>, vector<1x8x128xbf16>
    %4 = vector.shape_cast %3 : vector<1x8x128xbf16> to vector<8x128xbf16>
    %c0_5 = arith.constant 0 : index
    %c7 = arith.constant 7 : index
    %5 = vector.load %arg8[%c0_5, %c7] : memref<8x142xbf16, #tpu.memory_space<vmem>>, vector<8x128xbf16>
    tpu.vector_store %arg8[%c0_5, %c7], %4 {strides = array<i32>} : memref<8x142xbf16, #tpu.memory_space<vmem>>, vector<8x128xbf16>,
    %c0_6 = arith.constant 0 : index
    %c0_7 = arith.constant 0 : index
    %6 = vector.load %arg8[%c0_6, %c0_7] : memref<8x142xbf16, #tpu.memory_space<vmem>>, vector<8x128xbf16>
    %c0_8 = arith.constant 0 : index
    %c0_9 = arith.constant 0 : index
    %7 = vector.load %arg9[%c0_8, %c0_9] : memref<120x128xbf16, #tpu.memory_space<vmem>>, vector<8x128xbf16>
    tpu.vector_store %arg9[%c0_8, %c0_9], %6 {strides = array<i32>} : memref<120x128xbf16, #tpu.memory_space<vmem>>, vector<8x128xbf16>,
    %c0_10 = arith.constant 0 : index
    %c1 = arith.constant 1 : index
    %8 = vector.load %arg8[%c0_10, %c1] : memref<8x142xbf16, #tpu.memory_space<vmem>>, vector<8x128xbf16>
    %c8 = arith.constant 8 : index
    %c0_11 = arith.constant 0 : index
    %9 = vector.load %arg9[%c8, %c0_11] : memref<120x128xbf16, #tpu.memory_space<vmem>>, vector<8x128xbf16>
    tpu.vector_store %arg9[%c8, %c0_11], %8 {strides = array<i32>} : memref<120x128xbf16, #tpu.memory_space<vmem>>, vector<8x128xbf16>,
    %c0_12 = arith.constant 0 : index
    %c2 = arith.constant 2 : index
    %10 = vector.load %arg8[%c0_12, %c2] : memref<8x142xbf16, #tpu.memory_space<vmem>>, vector<8x128xbf16>
    %c16 = arith.constant 16 : index
    %c0_13 = arith.constant 0 : index
    %11 = vector.load %arg9[%c16, %c0_13] : memref<120x128xbf16, #tpu.memory_space<vmem>>, vector<8x128xbf16>
    tpu.vector_store %arg9[%c16, %c0_13], %10 {strides = array<i32>} : memref<120x128xbf16, #tpu.memory_space<vmem>>, vector<8x128xbf16>,
    %c0_14 = arith.constant 0 : index
    %c3 = arith.constant 3 : index
    %12 = vector.load %arg8[%c0_14, %c3] : memref<8x142xbf16, #tpu.memory_space<vmem>>, vector<8x128xbf16>
    %c24 = arith.constant 24 : index
    %c0_15 = arith.constant 0 : index
    %13 = vector.load %arg9[%c24, %c0_15] : memref<120x128xbf16, #tpu.memory_space<vmem>>, vector<8x128xbf16>
    tpu.vector_store %arg9[%c24, %c0_15], %12 {strides = array<i32>} : memref<120x128xbf16, #tpu.memory_space<vmem>>, vector<8x128xbf16>,
    %c0_16 = arith.constant 0 : index
    %c4 = arith.constant 4 : index
    %14 = vector.load %arg8[%c0_16, %c4] : memref<8x142xbf16, #tpu.memory_space<vmem>>, vector<8x128xbf16>
    %c32 = arith.constant 32 : index
    %c0_17 = arith.constant 0 : index
    %15 = vector.load %arg9[%c32, %c0_17] : memref<120x128xbf16, #tpu.memory_space<vmem>>, vector<8x128xbf16>
    tpu.vector_store %arg9[%c32, %c0_17], %14 {strides = array<i32>} : memref<120x128xbf16, #tpu.memory_space<vmem>>, vector<8x128xbf16>,
    %c0_18 = arith.constant 0 : index
    %c5 = arith.constant 5 : index
    %16 = vector.load %arg8[%c0_18, %c5] : memref<8x142xbf16, #tpu.memory_space<vmem>>, vector<8x128xbf16>
    %c40 = arith.constant 40 : index
    %c0_19 = arith.constant 0 : index
    %17 = vector.load %arg9[%c40, %c0_19] : memref<120x128xbf16, #tpu.memory_space<vmem>>, vector<8x128xbf16>
    tpu.vector_store %arg9[%c40, %c0_19], %16 {strides = array<i32>} : memref<120x128xbf16, #tpu.memory_space<vmem>>, vector<8x128xbf16>,
    %c0_20 = arith.constant 0 : index
    %c6 = arith.constant 6 : index
    %18 = vector.load %arg8[%c0_20, %c6] : memref<8x142xbf16, #tpu.memory_space<vmem>>, vector<8x128xbf16>
    %c48 = arith.constant 48 : index
    %c0_21 = arith.constant 0 : index
    %19 = vector.load %arg9[%c48, %c0_21] : memref<120x128xbf16, #tpu.memory_space<vmem>>, vector<8x128xbf16>
    tpu.vector_store %arg9[%c48, %c0_21], %18 {strides = array<i32>} : memref<120x128xbf16, #tpu.memory_space<vmem>>, vector<8x128xbf16>,
    %c0_22 = arith.constant 0 : index
    %c7_23 = arith.constant 7 : index
    %20 = vector.load %arg8[%c0_22, %c7_23] : memref<8x142xbf16, #tpu.memory_space<vmem>>, vector<8x128xbf16>
    %c56 = arith.constant 56 : index
    %c0_24 = arith.constant 0 : index
    %21 = vector.load %arg9[%c56, %c0_24] : memref<120x128xbf16, #tpu.memory_space<vmem>>, vector<8x128xbf16>
    tpu.vector_store %arg9[%c56, %c0_24], %20 {strides = array<i32>} : memref<120x128xbf16, #tpu.memory_space<vmem>>, vector<8x128xbf16>,
    %c0_25 = arith.constant 0 : index
    %c8_26 = arith.constant 8 : index
    %22 = vector.load %arg8[%c0_25, %c8_26] : memref<8x142xbf16, #tpu.memory_space<vmem>>, vector<8x128xbf16>
    %c64 = arith.constant 64 : index
    %c0_27 = arith.constant 0 : index
    %23 = vector.load %arg9[%c64, %c0_27] : memref<120x128xbf16, #tpu.memory_space<vmem>>, vector<8x128xbf16>
    tpu.vector_store %arg9[%c64, %c0_27], %22 {strides = array<i32>} : memref<120x128xbf16, #tpu.memory_space<vmem>>, vector<8x128xbf16>,
    %c0_28 = arith.constant 0 : index
    %c9 = arith.constant 9 : index
    %24 = vector.load %arg8[%c0_28, %c9] : memref<8x142xbf16, #tpu.memory_space<vmem>>, vector<8x128xbf16>
    %c72 = arith.constant 72 : index
    %c0_29 = arith.constant 0 : index
    %25 = vector.load %arg9[%c72, %c0_29] : memref<120x128xbf16, #tpu.memory_space<vmem>>, vector<8x128xbf16>
    tpu.vector_store %arg9[%c72, %c0_29], %24 {strides = array<i32>} : memref<120x128xbf16, #tpu.memory_space<vmem>>, vector<8x128xbf16>,
    %c0_30 = arith.constant 0 : index
    %c10 = arith.constant 10 : index
    %26 = vector.load %arg8[%c0_30, %c10] : memref<8x142xbf16, #tpu.memory_space<vmem>>, vector<8x128xbf16>
    %c80 = arith.constant 80 : index
    %c0_31 = arith.constant 0 : index
    %27 = vector.load %arg9[%c80, %c0_31] : memref<120x128xbf16, #tpu.memory_space<vmem>>, vector<8x128xbf16>
    tpu.vector_store %arg9[%c80, %c0_31], %26 {strides = array<i32>} : memref<120x128xbf16, #tpu.memory_space<vmem>>, vector<8x128xbf16>,
    %c0_32 = arith.constant 0 : index
    %c11 = arith.constant 11 : index
    %28 = vector.load %arg8[%c0_32, %c11] : memref<8x142xbf16, #tpu.memory_space<vmem>>, vector<8x128xbf16>
    %c88 = arith.constant 88 : index
    %c0_33 = arith.constant 0 : index
    %29 = vector.load %arg9[%c88, %c0_33] : memref<120x128xbf16, #tpu.memory_space<vmem>>, vector<8x128xbf16>
    tpu.vector_store %arg9[%c88, %c0_33], %28 {strides = array<i32>} : memref<120x128xbf16, #tpu.memory_space<vmem>>, vector<8x128xbf16>,
    %c0_34 = arith.constant 0 : index
    %c12 = arith.constant 12 : index
    %30 = vector.load %arg8[%c0_34, %c12] : memref<8x142xbf16, #tpu.memory_space<vmem>>, vector<8x128xbf16>
    %c96 = arith.constant 96 : index
    %c0_35 = arith.constant 0 : index
    %31 = vector.load %arg9[%c96, %c0_35] : memref<120x128xbf16, #tpu.memory_space<vmem>>, vector<8x128xbf16>
    tpu.vector_store %arg9[%c96, %c0_35], %30 {strides = array<i32>} : memref<120x128xbf16, #tpu.memory_space<vmem>>, vector<8x128xbf16>,
    %c0_36 = arith.constant 0 : index
    %c13 = arith.constant 13 : index
    %32 = vector.load %arg8[%c0_36, %c13] : memref<8x142xbf16, #tpu.memory_space<vmem>>, vector<8x128xbf16>
    %c104 = arith.constant 104 : index
    %c0_37 = arith.constant 0 : index
    %33 = vector.load %arg9[%c104, %c0_37] : memref<120x128xbf16, #tpu.memory_space<vmem>>, vector<8x128xbf16>
    tpu.vector_store %arg9[%c104, %c0_37], %32 {strides = array<i32>} : memref<120x128xbf16, #tpu.memory_space<vmem>>, vector<8x128xbf16>,
    %c0_38 = arith.constant 0 : index
    %c14 = arith.constant 14 : index
    %34 = vector.load %arg8[%c0_38, %c14] : memref<8x142xbf16, #tpu.memory_space<vmem>>, vector<8x128xbf16>
    %c112 = arith.constant 112 : index
    %c0_39 = arith.constant 0 : index
    %35 = vector.load %arg9[%c112, %c0_39] : memref<120x128xbf16, #tpu.memory_space<vmem>>, vector<8x128xbf16>
    tpu.vector_store %arg9[%c112, %c0_39], %34 {strides = array<i32>} : memref<120x128xbf16, #tpu.memory_space<vmem>>, vector<8x128xbf16>,
    %c0_40 = arith.constant 0 : index
    %c0_41 = arith.constant 0 : index
    %36 = vector.load %arg2[%c0_40, %c0_41] : memref<24x120xbf16, #tpu.memory_space<vmem>>, vector<24x120xbf16>
    %c0_42 = arith.constant 0 : index
    %c0_43 = arith.constant 0 : index
    %37 = vector.load %arg9[%c0_42, %c0_43] : memref<120x128xbf16, #tpu.memory_space<vmem>>, vector<120x128xbf16>
    %cst_44 = arith.constant dense<0.000000e+00> : vector<24x128xf32>
    %38 = tpu.matmul %36, %37, %cst_44 {dimension_numbers = #tpu.dot_dimension_numbers<[1], [0], [0], [1], [0, 0, 1, 1], [], []>} : vector<24x120xbf16>, vector<120x128xbf16>, vector<24x128xf32> -> vector<24x128xf32>
    %c0_45 = arith.constant 0 : index
    %c0_46 = arith.constant 0 : index
    %39 = vector.load %arg3[%c0_45, %c0_46] : memref<24x1xf32, #tpu.memory_space<vmem>>, vector<24x1xf32>
    %40 = vector.broadcast %39 : vector<24x1xf32> to vector<24x128xf32>
    %41 = arith.addf %38, %40 : vector<24x128xf32>
    %c0_47 = arith.constant 0 : index
    %c0_48 = arith.constant 0 : index
    %42 = vector.load %arg4[%c0_47, %c0_48] : memref<24x1xf32, #tpu.memory_space<vmem>>, vector<24x1xf32>
    %cst_49 = arith.constant 2.000000e+00 : f32
    %43 = vector.broadcast %cst_49 : f32 to vector<24x1xf32>
    %44 = arith.subf %43, %42 : vector<24x1xf32>
    %45 = vector.broadcast %44 : vector<24x1xf32> to vector<24x128xf32>
    %46 = arith.mulf %41, %45 : vector<24x128xf32>
    %47 = arith.negf %46 : vector<24x128xf32>
    %48 = math.exp %47 : vector<24x128xf32>
    %cst_50 = arith.constant 1.000000e+00 : f32
    %49 = vector.broadcast %cst_50 : f32 to vector<24x128xf32>
    %50 = arith.addf %49, %48 : vector<24x128xf32>
    %51 = arith.divf %49, %50 : vector<24x128xf32>
    %cst_51 = arith.constant 2.000000e+00 : f32
    %52 = vector.broadcast %cst_51 : f32 to vector<24x128xf32>
    %53 = arith.mulf %52, %51 : vector<24x128xf32>
    %cst_52 = arith.constant 1.000000e+00 : f32
    %54 = vector.broadcast %cst_52 : f32 to vector<24x128xf32>
    %55 = arith.subf %53, %54 : vector<24x128xf32>
    %cst_53 = arith.constant 1.000000e+00 : f32
    %56 = vector.broadcast %cst_53 : f32 to vector<24x128xf32>
    %57 = arith.subf %56, %51 : vector<24x128xf32>
    %58 = vector.broadcast %42 : vector<24x1xf32> to vector<24x128xf32>
    %59 = arith.mulf %58, %57 : vector<24x128xf32>
    %60 = arith.addf %55, %59 : vector<24x128xf32>
    %c0_54 = arith.constant 0 : index
    %c0_55 = arith.constant 0 : index
    %61 = vector.load %arg5[%c0_54, %c0_55] : memref<8x24xbf16, #tpu.memory_space<vmem>>, vector<8x24xbf16>
    %62 = arith.truncf %60 : vector<24x128xf32> to vector<24x128xbf16>
    %cst_56 = arith.constant dense<0.000000e+00> : vector<8x128xf32>
    %63 = tpu.matmul %61, %62, %cst_56 {dimension_numbers = #tpu.dot_dimension_numbers<[1], [0], [0], [1], [0, 0, 1, 1], [], []>} : vector<8x24xbf16>, vector<24x128xbf16>, vector<8x128xf32> -> vector<8x128xf32>
    %c0_57 = arith.constant 0 : index
    %c0_58 = arith.constant 0 : index
    %64 = vector.load %arg6[%c0_57, %c0_58] : memref<8x1xf32, #tpu.memory_space<vmem>>, vector<8x1xf32>
    %65 = vector.broadcast %64 : vector<8x1xf32> to vector<8x128xf32>
    %66 = arith.addf %63, %65 : vector<8x128xf32>
    %c0_59 = arith.constant 0 : index
    %c0_60 = arith.constant 0 : index
    %c0_61 = arith.constant 0 : index
    %67 = vector.load %arg7[%c0_59, %c0_60, %c0_61] : memref<1x8x128xf32, #tpu.memory_space<vmem>>, vector<1x8x128xf32>
    %68 = vector.shape_cast %67 : vector<1x8x128xf32> to vector<8x128xf32>
    %69 = vector.shape_cast %66 : vector<8x128xf32> to vector<1x8x128xf32>
    tpu.vector_store %arg7[%c0_59, %c0_60, %c0_61], %69 {strides = array<i32>} : memref<1x8x128xf32, #tpu.memory_space<vmem>>, vector<1x8x128xf32>,
    return
  }
  func.func @transform_0(%arg0: i32) -> (i32, i32, i32) {
    %c0_i32 = arith.constant 0 : i32
    %c0_i32_0 = arith.constant 0 : i32
    %c0_i32_1 = arith.constant 0 : i32
    return %arg0, %c0_i32, %c0_i32_0 : i32, i32, i32
  }
  func.func @transform_1(%arg0: i32) -> (i32, i32) {
    %c0_i32 = arith.constant 0 : i32
    %c0_i32_0 = arith.constant 0 : i32
    %c0_i32_1 = arith.constant 0 : i32
    return %c0_i32, %c0_i32_0 : i32, i32
  }
  func.func @transform_2(%arg0: i32) -> (i32, i32) {
    %c0_i32 = arith.constant 0 : i32
    %c0_i32_0 = arith.constant 0 : i32
    %c0_i32_1 = arith.constant 0 : i32
    return %c0_i32, %c0_i32_0 : i32, i32
  }
  func.func @transform_3(%arg0: i32) -> (i32, i32) {
    %c0_i32 = arith.constant 0 : i32
    %c0_i32_0 = arith.constant 0 : i32
    %c0_i32_1 = arith.constant 0 : i32
    return %c0_i32, %c0_i32_0 : i32, i32
  }
  func.func @transform_4(%arg0: i32) -> (i32, i32) {
    %c0_i32 = arith.constant 0 : i32
    %c0_i32_0 = arith.constant 0 : i32
    %c0_i32_1 = arith.constant 0 : i32
    return %c0_i32, %c0_i32_0 : i32, i32
  }
  func.func @transform_5(%arg0: i32) -> (i32, i32) {
    %c0_i32 = arith.constant 0 : i32
    %c0_i32_0 = arith.constant 0 : i32
    %c0_i32_1 = arith.constant 0 : i32
    return %c0_i32, %c0_i32_0 : i32, i32
  }
  func.func @transform_6(%arg0: i32) -> (i32, i32, i32) {
    %c0_i32 = arith.constant 0 : i32
    %c0_i32_0 = arith.constant 0 : i32
    %c0_i32_1 = arith.constant 0 : i32
    return %arg0, %c0_i32, %c0_i32_0 : i32, i32, i32
  }
}

</mosaic_0001>

<bundles_post_ra>
// kernel: square_wave_detector.1
= control target key start
LH: loop header
LB: loop body
LE: loop exit
PB: predicated region body
PF: predicated region fallthrough
CT: control target
= control target key end

     0   :  { %s868_s21 = smov 0   ;;  %s930_s0 = inlined_call_operand.vmem [shape: bf16[2,8,128], index: 0, kind: input, shape index: {}]   ;;  %s931_s1 = inlined_call_operand.vmem [shape: bf16[24,120], index: 1, kind: input, shape index: {}]   ;;  %s932_s2 = inlined_call_operand.vmem [shape: f32[24,1], index: 2, kind: input, shape index: {}]   ;;  %s933_s3 = inlined_call_operand.vmem [shape: f32[24,1], index: 3, kind: input, shape index: {}]   ;;  %s934_s4 = inlined_call_operand.vmem [shape: bf16[8,24], index: 4, kind: input, shape index: {}]   ;;  %s935_s5 = inlined_call_operand.vmem [shape: f32[8,1], index: 5, kind: input, shape index: {}]   ;;  %s936_s6 = inlined_call_operand.vmem [shape: f32[2,8,128], index: 6, kind: output, shape index: {}]  }
   0x1 LB: > { %s704_s22 = sadd.s32 4294967295, %s815_s21   ;;  %p708_p0 = scmp.ge.s32.totalorder %s815_s21, 1  ;;  %s815_s21 = sphi %s868_s21, %s16_s21  }
   0x2   : > { %p211_p1 = scmp.lt.s32.totalorder %s815_s21, 3 }
   0x4   : > { %p212_p2 = pnand %p708_p0, %p211_p1 }
   0x5   : > { %p239_p3 = scmp.lt.s32.totalorder (!%p212_p2), %s704_s22, 1  ;;  %s818_s27 = smov (!%p212_p2), 7  }
   0x6   : > { %215 = sbr.rel (%p212_p2) target bundleno = 620 (0x26c), region = 44  ;;  %s819_s28 = smov (!%p212_p2), 114  }
   0x7   : > { %s820_s29 = smov (!%p212_p2), 116   ;;  %s821_s30 = smov (!%p212_p2), 118  }
   0x8   : > { %s822_s7 = smov (!%p212_p2), 115   ;;  %s823_s8 = smov (!%p212_p2), 120  }
   0x9   : > { %s824_s9 = smov (!%p212_p2), 117   ;;  %s825_s10 = smov (!%p212_p2), 119  }
   0xa   : > { %s826_s11 = smov (!%p212_p2), 121   ;;  %s827_s12 = smov (!%p212_p2), 122  }
   0xb   : > { %vm248_vm0 = vcmask 52224   ;;  %vm250_vm1 = vcmask 109624   ;;  %v817_v0 = vmov 0   ;;  %s940_s22 = smov (!%p239_p3, %s704_s22), 1  ;;  %vm260_vm2 = vcmask 1043512   ;;  %s828_s13 = smov 124  }
   0xc   : > { %249 = vst.msk [vmem:[#allocation2] sm:$0xf] %vm248_vm0, %v817_v0  ;;  %795 = vset.pattern.permute.xlu1 %v817_v0  ;;  %794 = vset.pattern.permute.xlu0 %v817_v0  ;;  %s709_s23 = sshll.u32 %s940_s22, 2  ;;  %vm261_vm3 = vcmask 56324   ;;  %vm257_vm4 = vcmask 56320   ;;  %s829_s14 = smov 126  }
   0xd   : > { %251 = vst.msk [vmem:[#allocation2 + $0x4] sm:$0xf] %vm250_vm1, %v817_v0  ;;  %796 = vset.pattern.permute.xlu2 %v817_v0  ;;  %s242_s26 = scalar_lea.vmem %s930_s0, %s709_s23  ;;  %vm262_vm5 = vmor %vm261_vm3, %vm260_vm2  ;;  %s830_s15 = smov 123   ;;  %vm352_vm6 = vcmask 965632   ;;  %vm361_vm7 = vcmask 957440   ;;  %vm316_vm8 = vcmask 998400  }
   0xe   : > { %v252_v1 = vld [vmem:[%s242_s26] sm:$0xf]  ;;  %s831_s16 = smov 125   ;;  %s832_s17 = smov 127   ;;  %vm388_vm9 = vcmask 932864   ;;  %vm370_vm10 = vcmask 949248  }
   0xf   : > { %254 = vrot.lane.b32.xlu0 %v252_v1, %s818_s27  ;;  %vm307_vm11 = vcmask 1006592   ;;  %v512_v25 = vld [vmem:[%s933_s3 + $0x10] sm:$0xff]  ;;  %vm379_vm12 = vcmask 941056   ;;  %vm334_vm13 = vcmask 982016   ;;  %vm271_vm14 = vcmask 1039360   ;;  %v411_v44 = vld [vmem:[%s932_s2 + $0x8] sm:$0xff] }
  0x10   : > { %v515_v26 = vsub.f32 2.0, %v512_v25  ;;  %vm488_vm15 = vcmask 1043456   ;;  %vm343_vm0 = vcmask 973824   ;;  %vm325_vm1 = vcmask 990208   ;;  %v412_v45 = vld [vmem:[%s932_s2 + $0x10] sm:$0xff]  ;;  %v511_v49 = vld [vmem:[%s933_s3 + $0x8] sm:$0xff] }
  0x11   : > { %v410_v50 = vld [vmem:[%s932_s2] sm:$0xff]  ;;  %v514_v51 = vsub.f32 2.0, %v511_v49  ;;  %vm298_vm2 = vcmask 1014784   ;;  %vm280_vm3 = vcmask 1031168  }
  0x12   : > { %v510_v53 = vld [vmem:[%s933_s3] sm:$0xff] }
  0x13   : > { %v513_v58 = vsub.f32 2.0, %v510_v53  ;;  %v624_v63 = vld [vmem:[%s935_s5] sm:$0xff] }
  0x81   : > { %v255_v2 = vpop.permute.xlu0 %254 }
  0x82   : > { %v256_v3 = vrot.slane %v255_v2, 4 }
  0x84   : > { %v258_v4 = vsel %vm257_vm4, %v256_v3, %v255_v2  ;;  %vm289_vm4 = vcmask 1022976  }
  0x85   : > { %263 = vst.msk [vmem:[#allocation2] sm:$0xff] %vm262_vm5, %v258_v4  ;;  %v394_v4 = vld [vmem:[%s931_s1 + $0x8] sm:$0xf] }
  0x8c   : > { %v383_v5 = vld [vmem:[#allocation2] sm:$0xff] }
  0x8d   : > { %v264_v6 = vld [vmem:[#allocation2] sm:$0xf]  ;;  %385 = vrot.lane.b32.xlu0 %v383_v5, %s819_s28  ;;  %367 = vrot.lane.b32.xlu1 %v383_v5, %s820_s29 }
  0x8e   : > { %265 = vst [vmem:[#allocation3] sm:$0xf] %v264_v6  ;;  %349 = vrot.lane.b32.xlu2 %v383_v5, %s821_s30  ;;  %v433_v6 = vunpack.c.l.b16 %v394_v4 }
  0x95   : > { %376 = vrot.lane.b32.xlu1 %v383_v5, %s822_s7  ;;  %331 = vrot.lane.b32.xlu0 %v383_v5, %s823_s8 }
  0x96   : > { %358 = vrot.lane.b32.xlu2 %v383_v5, %s824_s9 }
  0x9d   : > { %340 = vrot.lane.b32.xlu1 %v383_v5, %s825_s10  ;;  %322 = vrot.lane.b32.xlu0 %v383_v5, %s826_s11 }
  0x9e   : > { %313 = vrot.lane.b32.xlu2 %v383_v5, %s827_s12 }
  0xa5   : > { %295 = vrot.lane.b32.xlu1 %v383_v5, %s828_s13  ;;  %277 = vrot.lane.b32.xlu0 %v383_v5, %s829_s14 }
  0xa6   : > { %304 = vrot.lane.b32.xlu2 %v383_v5, %s830_s15 }
  0xad   : > { %286 = vrot.lane.b32.xlu1 %v383_v5, %s831_s16  ;;  %425 = vperm.xlu0 %794, %v412_v45   ;;  %s710_s16 = sshll.u32 %s940_s22, 3 }
  0xae   : > { %268 = vrot.lane.b32.xlu2 %v383_v5, %s832_s17  ;;  %s246_s19 = scalar_lea.vmem %s936_s6, %s710_s16 }
  0xb5   : > { %528 = vperm.xlu1 %795, %v515_v26   ;;  %523 = vperm.xlu0 %794, %v514_v51  }
  0xb6   : > { %415 = vperm.xlu2 %796, %v410_v50  }
  0xbd   : > { %420 = vperm.xlu1 %795, %v411_v44   ;;  %607 = vperm.xlu0 %794, %v511_v49  }
  0xbe   : > { %518 = vperm.xlu2 %796, %v513_v58  }
  0xc5   : > { %612 = vperm.xlu1 %795, %v512_v25  }
  0xc6   : > { %602 = vperm.xlu2 %796, %v510_v53  }
  0xcd   : > { %627 = vperm.xlu1 %795, %v624_v63  }
  0xe8   : > { %v350_v7 = vpop.permute.xlu2 %349 }
  0xe9   : > { %v351_v8 = vrot.slane %v350_v7, 4 }
  0xeb   : > { %v353_v9 = vsel %vm352_vm6, %v350_v7, %v351_v8  ;;  %v754_v8 = vld [vmem:[%s931_s1] sm:$0xff] }
  0xec   : > { %355 = vst [vmem:[#allocation3 + $0x28] sm:$0xf] %v353_v9  ;;  %v435_v9 = vpack.c.b16 %v433_v6, %v433_v6 }
  0xf0   : > { %v359_v10 = vpop.permute.xlu2 %358 }
  0xf1   : > { %v360_v11 = vrot.slane %v359_v10, 4 }
  0xf3   : > { %v362_v12 = vsel %vm361_vm7, %v359_v10, %v360_v11 }
  0xf4   : > { %364 = vst [vmem:[#allocation3 + $0x2c] sm:$0xf] %v362_v12 }
  0xf8   : > { %v314_v13 = vpop.permute.xlu2 %313 }
  0xf9   : > { %v315_v14 = vrot.slane %v314_v13, 4 }
  0xfb   : > { %v317_v15 = vsel %vm316_vm8, %v314_v13, %v315_v14  ;;  %v760_v52 = vld [vmem:[#allocation3 + $0x28] sm:$0xff] }
  0xfc   : > { %319 = vst [vmem:[#allocation3 + $0x18] sm:$0xf] %v317_v15 }
  0xff   : > { %v386_v16 = vpop.permute.xlu0 %385  ;;  %v368_v17 = vpop.permute.xlu1 %367 }
 0x100   : > { %v387_v18 = vrot.slane %v386_v16, 4  ;;  %v369_v19 = vrot.slane %v368_v17, 4  ;;  %v305_v20 = vpop.permute.xlu2 %304 }
 0x101   : > { %v306_v21 = vrot.slane %v305_v20, 4 }
 0x102   : > { %v389_v22 = vsel %vm388_vm9, %v386_v16, %v387_v18  ;;  %v371_v23 = vsel %vm370_vm10, %v368_v17, %v369_v19 }
 0x103   : > { %391 = vst [vmem:[#allocation3 + $0x38] sm:$0xf] %v389_v22  ;;  %v308_v24 = vsel %vm307_vm11, %v305_v20, %v306_v21 }
 0x104   : > { %373 = vst [vmem:[#allocation3 + $0x30] sm:$0xf] %v371_v23 }
 0x105   : > { %310 = vst [vmem:[#allocation3 + $0x14] sm:$0xf] %v308_v24 }
 0x107   : > { %v377_v27 = vpop.permute.xlu1 %376  ;;  %v332_v28 = vpop.permute.xlu0 %331 }
 0x108   : > { %v378_v29 = vrot.slane %v377_v27, 4  ;;  %v333_v30 = vrot.slane %v332_v28, 4  ;;  %v269_v31 = vpop.permute.xlu2 %268 }
 0x109   : > { %v270_v32 = vrot.slane %v269_v31, 4 }
 0x10a   : > { %v380_v33 = vsel %vm379_vm12, %v377_v27, %v378_v29  ;;  %v335_v34 = vsel %vm334_vm13, %v332_v28, %v333_v30  ;;  %v409_v35 = vld [vmem:[#allocation3 + $0x38] sm:$0xf] }
 0x10b   : > { %382 = vst [vmem:[#allocation3 + $0x34] sm:$0xf] %v380_v33  ;;  %v272_v36 = vsel %vm271_vm14, %v269_v31, %v270_v32  ;;  %v465_v37 = vunpack.c.l.b16 %v409_v35 }
 0x10c   : > { %337 = vst [vmem:[#allocation3 + $0x20] sm:$0xf] %v335_v34 }
 0x10d   : > { %274 = vst [vmem:[#allocation3 + $0x4] sm:$0xf] %v272_v36  ;;  %v473_v38 = vpack.c.b16 %v465_v37, %v465_v37 }
 0x10f   : > { %v341_v39 = vpop.permute.xlu1 %340  ;;  %v323_v40 = vpop.permute.xlu0 %322  ;;  %v490_v41 = vsel %vm488_vm15, %v473_v38, 0 }
 0x110   : > { %v342_v42 = vrot.slane %v341_v39, 4  ;;  %v324_v43 = vrot.slane %v323_v40, 4  ;;  %492 = vmatpush.bf16.msra.mxu0 %v490_v41  ;;  %762 = vmatpush.bf16.msra.mxu2 %v490_v41  ;;  %v416_v10 = vpop.permute.xlu2 %415 }
 0x112   : > { %v344_v46 = vsel %vm343_vm0, %v341_v39, %v342_v42  ;;  %v326_v47 = vsel %vm325_vm1, %v323_v40, %v324_v43  ;;  %v761_v48 = vld [vmem:[#allocation3 + $0x30] sm:$0xff] }
 0x113   : > { %346 = vst [vmem:[#allocation3 + $0x24] sm:$0xf] %v344_v46 }
 0x114   : > { %328 = vst [vmem:[#allocation3 + $0x1c] sm:$0xf] %v326_v47  ;;  %493 = vmatpush.bf16.msra.mxu0 %v761_v48  ;;  %763 = vmatpush.bf16.msra.mxu2 %v761_v48  ;;  %v755_v7 = vld [vmem:[#allocation3] sm:$0xff] }
 0x117   : > { %v296_v54 = vpop.permute.xlu1 %295  ;;  %v278_v55 = vpop.permute.xlu0 %277 }
 0x118   : > { %v297_v56 = vrot.slane %v296_v54, 4  ;;  %v279_v57 = vrot.slane %v278_v55, 4  ;;  %494 = vmatpush.bf16.msra.mxu0 %v760_v52  ;;  %764 = vmatpush.bf16.msra.mxu2 %v760_v52  ;;  %v519_v15 = vpop.permute.xlu2 %518 }
 0x11a   : > { %v299_v59 = vsel %vm298_vm2, %v296_v54, %v297_v56  ;;  %v281_v60 = vsel %vm280_vm3, %v278_v55, %v279_v57  ;;  %v759_v61 = vld [vmem:[#allocation3 + $0x20] sm:$0xff]  ;;  %vm630_vm2 = vcmask 195584  }
 0x11b   : > { %301 = vst [vmem:[#allocation3 + $0x10] sm:$0xf] %v299_v59  ;;  %v758_v62 = vld [vmem:[#allocation3 + $0x18] sm:$0xff] }
 0x11c   : > { %283 = vst [vmem:[#allocation3 + $0x8] sm:$0xf] %v281_v60  ;;  %495 = vmatpush.bf16.msra.mxu0 %v759_v61  ;;  %765 = vmatpush.bf16.msra.mxu2 %v759_v61 }
 0x11f   : > { %v287_v0 = vpop.permute.xlu1 %286  ;;  %v426_v12 = vpop.permute.xlu0 %425 }
 0x120   : > { %v288_v1 = vrot.slane %v287_v0, 4  ;;  %496 = vmatpush.bf16.msra.mxu0 %v758_v62  ;;  %766 = vmatpush.bf16.msra.mxu2 %v758_v62 }
 0x122   : > { %v290_v2 = vsel %vm289_vm4, %v287_v0, %v288_v1  ;;  %v757_v3 = vld [vmem:[#allocation3 + $0x10] sm:$0xff] }
 0x123   : > { %292 = vst [vmem:[#allocation3 + $0xc] sm:$0xf] %v290_v2 }
 0x124   : > { %497 = vmatpush.bf16.msra.mxu0 %v757_v3  ;;  %767 = vmatpush.bf16.msra.mxu2 %v757_v3 }
 0x127   : > { %v529_v11 = vpop.permute.xlu1 %528  ;;  %v524_v24 = vpop.permute.xlu0 %523 }
 0x12a   : > { %v756_v5 = vld [vmem:[#allocation3 + $0x8] sm:$0xff] }
 0x12b   : > { %498 = vmatpush.bf16.msra.mxu0 %v756_v5  ;;  %768 = vmatpush.bf16.msra.mxu2 %v756_v5 }
 0x12f   : > { %499 = vmatpush.bf16.msra.mxu0 %v755_v7  ;;  %769 = vmatpush.bf16.msra.mxu2 %v755_v7  ;;  %v421_v20 = vpop.permute.xlu1 %420 }
 0x132   : > { %743 = vmatmul.msk.bf16.vlgmr.msra.gmra.mxu0 %vm334_vm13, %v754_v8  ;;  %744 = vmatmul.msk.bf16.vlgmr.msra.gmra.mxu2 %vm334_vm13, %v435_v9 }
 0x137   : > { %v613_v3 = vpop.permute.xlu1 %612 }
 0x1af   : > { %v501_v13 = vpop.f32.mrf.mxu0 }
 0x1b0   : > { %v502_v14 = vadd.f32 %v501_v13, %v416_v10 }
 0x1b2   : > { %v531_v16 = vmul.f32 %v519_v15, %v502_v14 }
 0x1b4   : > { %v745_v17 = vmul.f32 -1.442695, %v531_v16 }
 0x1b5   : > { %v506_v18 = vpop.f32.mrf.mxu2 }
 0x1b6   : > { %797 = vpow2.f32 %v745_v17  ;;  %v507_v19 = vadd.f32 %v506_v18, %v426_v12  ;;  %v603_v12 = vpop.permute.xlu2 %602 }
 0x1b7   : > { %v503_v21 = vpop.f32.mrf.mxu0 }
 0x1b8   : > { %v533_v22 = vmul.f32 %v529_v11, %v507_v19  ;;  %v504_v23 = vadd.f32 %v503_v21, %v421_v20  ;;  %v608_v11 = vpop.permute.xlu0 %607 }
 0x1ba   : > { %v747_v25 = vmul.f32 -1.442695, %v533_v22  ;;  %v532_v26 = vmul.f32 %v524_v24, %v504_v23  ;;  %v621_v23 = vld [vmem:[%s934_s4] sm:$0xf]  ;;  %v628_v24 = vpop.permute.xlu1 %627 }
 0x1bc   : > { %v798_v27 = vpop.eup %797  ;;  %799 = vpow2.f32 %v747_v25  ;;  %v746_v28 = vmul.f32 -1.442695, %v532_v26 }
 0x1bd   : > { %v543_v29 = vadd.f32 1.0, %v798_v27  ;;  %v508_v30 = vpop.f32.mrf.mxu2 }
 0x1be   : > { %801 = vpow2.f32 %v746_v28 }
 0x1bf   : > { %803 = vrcp.f32 %v543_v29  ;;  %v557_v43 = vand.u32 2147483648, %v543_v29  ;;  %vm551_vm6 = vweird.f32 %v543_v29  ;;  %v555_v46 = vand.u32 2147483647, %v543_v29 }
 0x1c1   : > { %v558_v53 = vor.u32 1.1754944e-38, %v557_v43  ;;  %vm556_vm11 = vcmp.eq.f32.partialorder %v555_v46, 8.507059e+37 }
 0x1c2   : > { %v800_v31 = vpop.eup %799 }
 0x1c3   : > { %v545_v32 = vadd.f32 1.0, %v800_v31 }
 0x1c4   : > { %v802_v33 = vpop.eup %801 }
 0x1c5   : > { %v804_v34 = vpop.eup %803  ;;  %805 = vrcp.f32 %v545_v32  ;;  %v544_v35 = vadd.f32 1.0, %v802_v33  ;;  %v585_v47 = vand.u32 2147483647, %v545_v32  ;;  %v587_v48 = vand.u32 2147483648, %v545_v32 }
 0x1c6   : > { %v547_v36 = vmul.f32 %v804_v34, %v543_v29  ;;  %vm552_vm5 = vweird.f32 %v804_v34  ;;  %vm581_vm9 = vweird.f32 %v545_v32 }
 0x1c7   : > { %807 = vrcp.f32 %v544_v35  ;;  %vm913_vm7 = vmor %vm551_vm6, %vm552_vm5  ;;  %v572_v54 = vand.u32 2147483648, %v544_v35  ;;  %v570_v57 = vand.u32 2147483647, %v544_v35  ;;  %vm586_vm13 = vcmp.eq.f32.partialorder %v585_v47, 8.507059e+37 }
 0x1c8   : > { %v548_v37 = vsub.f32 1.0, %v547_v36  ;;  %v588_v58 = vor.u32 1.1754944e-38, %v587_v48  ;;  %vm566_vm14 = vweird.f32 %v544_v35 }
 0x1c9   : > { %v573_v63 = vor.u32 1.1754944e-38, %v572_v54  ;;  %vm571_vm1 = vcmp.eq.f32.partialorder %v570_v57, 8.507059e+37 }
 0x1ca   : > { %v549_v38 = vmul.f32 %v804_v34, %v548_v37 }
 0x1cb   : > { %v806_v39 = vpop.eup %805 }
 0x1cc   : > { %v577_v40 = vmul.f32 %v806_v39, %v545_v32  ;;  %v550_v42 = vadd.f32 %v804_v34, %v549_v38  ;;  %vm582_vm8 = vweird.f32 %v806_v39 }
 0x1cd   : > { %v808_v41 = vpop.eup %807  ;;  %vm583_vm12 = vmor %vm581_vm9, %vm582_vm8 }
 0x1ce   : > { %v562_v44 = vmul.f32 %v808_v41, %v544_v35  ;;  %v578_v45 = vsub.f32 1.0, %v577_v40  ;;  %v554_v52 = vsel %vm913_vm7, %v804_v34, %v550_v42  ;;  %vm567_vm10 = vweird.f32 %v808_v41 }
 0x1cf   : > { %v559_v59 = vsel %vm556_vm11, %v558_v53, %v554_v52  ;;  %vm568_vm0 = vmor %vm566_vm14, %vm567_vm10 }
 0x1d0   : > { %v579_v50 = vmul.f32 %v806_v39, %v578_v45  ;;  %v563_v51 = vsub.f32 1.0, %v562_v44  ;;  %v591_v4 = vmul.f32 2.0, %v559_v59  ;;  %v597_v5 = vsub.f32 1.0, %v559_v59 }
 0x1d2   : > { %v580_v55 = vadd.f32 %v806_v39, %v579_v50  ;;  %v564_v56 = vmul.f32 %v808_v41, %v563_v51  ;;  %v748_v16 = vadd.f32 -1.0, %v591_v4  ;;  %v615_v17 = vmul.f32 %v603_v12, %v597_v5 }
 0x1d4   : > { %v584_v60 = vsel %vm583_vm12, %v806_v39, %v580_v55  ;;  %v565_v61 = vadd.f32 %v808_v41, %v564_v56  ;;  %v618_v21 = vadd.f32 %v748_v16, %v615_v17 }
 0x1d5   : > { %v589_v62 = vsel %vm586_vm13, %v588_v58, %v584_v60 }
 0x1d6   : > { %v593_v0 = vmul.f32 2.0, %v589_v62  ;;  %v599_v1 = vsub.f32 1.0, %v589_v62  ;;  %v569_v2 = vsel %vm568_vm0, %v808_v41, %v565_v61 }
 0x1d7   : > { %v574_v6 = vsel %vm571_vm1, %v573_v63, %v569_v2 }
 0x1d8   : > { %v750_v7 = vadd.f32 -1.0, %v593_v0  ;;  %v617_v8 = vmul.f32 %v613_v3, %v599_v1  ;;  %v592_v9 = vmul.f32 2.0, %v574_v6  ;;  %v598_v10 = vsub.f32 1.0, %v574_v6 }
 0x1da   : > { %v620_v13 = vadd.f32 %v750_v7, %v617_v8  ;;  %v749_v14 = vadd.f32 -1.0, %v592_v9  ;;  %v616_v15 = vmul.f32 %v608_v11, %v598_v10 }
 0x1dc   : > { %v623_v18 = vpack.c.bf16 %v620_v13, %v620_v13  ;;  %v619_v19 = vadd.f32 %v749_v14, %v616_v15 }
 0x1de   : > { %v635_v20 = vsel %vm488_vm15, %v623_v18, 0  ;;  %v622_v22 = vpack.c.bf16 %v619_v19, %v618_v21 }
 0x1df   : > { %643 = vmatpush.bf16.msra.mxu1 %v635_v20 }
 0x1e3   : > { %644 = vmatpush.bf16.msra.mxu1 %v622_v22 }
 0x1e6   : > { %751 = vmatmul.msk.bf16.vlgmr.msra.gmra.mxu1 %vm630_vm2, %v621_v23 }
 0x263   : > { %v646_v25 = vpop.f32.mrf.mxu1 }
 0x264   : > { %v647_v26 = vadd.f32 %v646_v25, %v628_v24 }
 0x266   : > { %650 = vst [vmem:[%s246_s19] sm:$0xff] %v647_v26 }
 0x26b   : > { %v648_v27 = vpop.f32.mrf.mxu1 }
 0x26c PF: > { %s16_s21 = sadd.s32 1, %s815_s21  }
 0x26d   : > { %p13_p4 = scmp.ge.s32.totalorder %s16_s21, 4  }
 0x26f   :  { %15 = sbr.rel (!%p13_p4) target bundleno = 1 (0x1), region = 74 }

</bundles_post_ra>
